<compile_context>
chip_gen: v5e
topology: v5e:2x2
jax: 0.10.0
libtpu: 0.0.40
codegen_flags: <defaults>
</compile_context>

<pallas_src>
import math
from functools import partial

import numpy as np
import jax
import jax.numpy as jnp
from jax.experimental import pallas as pl
from jax.experimental.pallas import tpu as pltpu

_TARGET_BLOCK_BYTES = 4 * 1024 * 1024      # ~4 MiB per grid step (v6e/v7x knee)
_VMEM_LIMIT_BYTES = 32 * 1024 * 1024       # explicit: v5e default is only 16 MiB
_MIN_SPLIT_BYTES = 2 * 1024 * 1024         # enough work to bother feeding 2 TCs


def _get_sinusoidal_table_np(theta, n_position, embed_dim):
    """Faithful port of SinusoidalPE._get_sinusoidal_table (numpy, init-time).

    NOTE: the reference defines the inner helper as `_get_theta_table(self, pos)`
    and calls it as `_get_theta_table(pos, embed_dim)`, so the value used as
    `pos` inside is actually `embed_dim` (every row ends up identical).  We
    reproduce that behavior exactly rather than "fixing" it.
    """
    def _get_theta_table(self_, pos):
        return [pos / np.power(theta, 2 * (i // 2) / embed_dim)
                for i in range(embed_dim)]

    table = np.array([_get_theta_table(pos, embed_dim) for pos in range(n_position)])
    table[:, 0::2] = np.sin(table[:, 0::2])
    table[:, 1::2] = np.cos(table[:, 1::2])
    # unsqueeze(0) -> (1, n_position, embed_dim), float32
    return table[None, ...].astype(np.float32)


def _add_pe_kernel(x_ref, pe_ref, o_ref):
    # x_ref: (tb, ts, D); pe_ref: (1, 1, D) (row-constant) or (1, ts, D), f32.
    # Add in f32 (PE buffer dtype, matches the torch f32-buffer add), cast once.
    o_ref[...] = (x_ref[...].astype(jnp.float32) + pe_ref[...]).astype(o_ref.dtype)


def _choose_tiles(B, S, D, itemsize):
    """Pick (tb, ts): ~4 MiB per block, batch-blocked when S*D is small."""
    sub = 8 if itemsize >= 4 else (16 if itemsize == 2 else 32)
    rows = max(sub, _TARGET_BLOCK_BYTES // max(1, D * itemsize))
    if rows < S:
        ts = max(sub, (rows // sub) * sub)     # sublane-aligned seq tile
        tb = 1
    else:
        ts = S                                  # full seq extent (always legal)
        tb = max(1, min(B, rows // max(1, S)))  # block batch to reach payload
        while B % tb != 0:                      # even batch split (balanced grid)
            tb -= 1

    # v7x has 2 TensorCores: if everything landed in one block but there is a
    # meaningful amount of work, split so both cores get a share.
    num_steps = pl.cdiv(S, ts) * pl.cdiv(B, tb)
    if num_steps == 1 and B * S * D * itemsize >= _MIN_SPLIT_BYTES:
        if tb > 1:
            tb = max(1, tb // 2)
            while B % tb != 0:
                tb -= 1
        else:
            half = -(-S // 2)
            half = -(-half // sub) * sub        # round up to sublane multiple
            if half < S:
                ts = half
    return tb, ts


@partial(jax.jit, donate_argnums=(0,))
def _pe_add(x, pe):
    """x: (B, S, D).  pe: (1, 1, D) row-constant fast path, or (1, n_pos, D)."""
    B, S, D = x.shape
    itemsize = x.dtype.itemsize
    tb, ts = _choose_tiles(B, S, D, itemsize)
    num_s = pl.cdiv(S, ts)
    num_b = pl.cdiv(B, tb)

    if pe.shape[1] == 1:
        # Single cached row, broadcast over (tb, ts) inside the kernel.
        pe_spec = pl.BlockSpec((1, 1, D), lambda s, b: (0, 0, 0))
    else:
        # Full table passed; index_map selects rows -> no wrapper-side slice.
        # PE block index depends only on the outer (s) axis, so each PE tile is
        # fetched once and reused across all batch iterations.
        pe_spec = pl.BlockSpec((1, ts, D), lambda s, b: (0, s, 0))

    return pl.pallas_call(
        _add_pe_kernel,
        out_shape=jax.ShapeDtypeStruct((B, S, D), x.dtype),
        grid_spec=pl.GridSpec(
            grid=(num_s, num_b),               # seq-tiles outer, batch-tiles inner
            in_specs=[
                pl.BlockSpec((tb, ts, D), lambda s, b: (b, s, 0)),   # x
                pe_spec,                                             # pe (f32)
            ],
            out_specs=pl.BlockSpec((tb, ts, D), lambda s, b: (b, s, 0)),
        ),
        # x has the same shape/dtype as the output and is fully overwritten;
        # combined with donate_argnums above this is a true in-place update.
        input_output_aliases={0: 0},
        compiler_params=pltpu.CompilerParams(
            dimension_semantics=("parallel", "parallel"),
            vmem_limit_bytes=_VMEM_LIMIT_BYTES,
        ),
    )(x, pe)


class SinusoidalPE:
    """Pallas port of the PyTorch SinusoidalPE module.

    WARNING: __call__ donates x (its buffer is reused for the output); callers
    must not read x after calling this module.
    """

    def __init__(self, embed_dim=512, theta=10000, n_position=1024):
        self.embed_dim = embed_dim
        table = _get_sinusoidal_table_np(theta, n_position, embed_dim)
        # Detect the (reproduced) row-constant table: if every position row is
        # identical we only stream one (1, 1, D) row and broadcast it. If the
        # upstream helper is ever "fixed", this flips and we fall back to
        # streaming real per-position rows from the full table.
        self._rows_constant = bool(np.all(table == table[:, :1, :]))
        # Both operands kept in f32 (the reference buffer dtype); the kernel
        # adds in f32 and casts once, so no per-call astype/slice is dispatched.
        self.pe_table = jnp.asarray(table)             # (1, n_position, D) f32
        self._pe_row = jnp.asarray(table[:, :1, :])    # (1, 1, D) f32

    def __call__(self, x):
        B, S, D = x.shape
        assert D == self.embed_dim
        assert S <= self.pe_table.shape[1]
        pe = self._pe_row if self._rows_constant else self.pe_table
        return _pe_add(x, pe)


if __name__ == "__main__":
    # Small shapes consistent with the forward: (batch, seq, embed_dim).
    B, S, D = 2, 8, 32
    n_position = 64
    theta = 10000

    key = jax.random.PRNGKey(0)
    x = jax.random.normal(key, (B, S, D), dtype=jnp.float32)

    module = SinusoidalPE(embed_dim=D, theta=theta, n_position=n_position)

    # Reference computed (and materialized) BEFORE the kernel call: x is
    # donated into the output, so its buffer is invalid afterwards.
    ref = jax.block_until_ready(x + module.pe_table[:, :S, :])

    out = module(x)
    out = jax.block_until_ready(out)

    assert out.shape == (B, S, D)
    assert out.dtype == jnp.float32
    assert jnp.allclose(out, ref, atol=1e-6, rtol=1e-6)

    print("KERNEL_OK")
</pallas_src>

<mosaic_0001>
module attributes {stable_mosaic.version = 11 : i64} {
  func.func @_add_pe_kernel(%arg0: i32, %arg1: i32, %arg2: memref<2x8x32xf32, #tpu.memory_space<vmem>>, %arg3: memref<1x1x32xf32, #tpu.memory_space<vmem>>, %arg4: memref<2x8x32xf32, #tpu.memory_space<vmem>>) attributes {dimension_semantics = [#tpu.dimension_semantics<parallel>, #tpu.dimension_semantics<parallel>], iteration_bounds = array<i64: 1, 1>, scalar_prefetch = 0 : i64, scratch_operands = 0 : i64, tpu.core_type = #tpu.core_type<tc>, window_params = [{transform_indices = @transform_0, window_bounds = array<i64: 2, 8, 32>}, {pipeline_mode = #tpu.pipeline_mode<synchronous>, transform_indices = @transform_1, window_bounds = array<i64: 1, 1, 32>}, {transform_indices = @transform_2, window_bounds = array<i64: 2, 8, 32>}]} {
    %c0 = arith.constant 0 : index
    %c0_0 = arith.constant 0 : index
    %c0_1 = arith.constant 0 : index
    %0 = vector.load %arg2[%c0, %c0_0, %c0_1] : memref<2x8x32xf32, #tpu.memory_space<vmem>>, vector<2x8x32xf32>
    %c0_2 = arith.constant 0 : index
    %c0_3 = arith.constant 0 : index
    %c0_4 = arith.constant 0 : index
    %1 = vector.load %arg3[%c0_2, %c0_3, %c0_4] : memref<1x1x32xf32, #tpu.memory_space<vmem>>, vector<1x1x32xf32>
    %2 = vector.broadcast %1 : vector<1x1x32xf32> to vector<2x8x32xf32>
    %3 = arith.addf %0, %2 : vector<2x8x32xf32>
    %c0_5 = arith.constant 0 : index
    %c0_6 = arith.constant 0 : index
    %c0_7 = arith.constant 0 : index
    %4 = vector.load %arg4[%c0_5, %c0_6, %c0_7] : memref<2x8x32xf32, #tpu.memory_space<vmem>>, vector<2x8x32xf32>
    tpu.vector_store %arg4[%c0_5, %c0_6, %c0_7], %3 {strides = array<i32>} : memref<2x8x32xf32, #tpu.memory_space<vmem>>, vector<2x8x32xf32>,
    return
  }
  func.func @transform_0(%arg0: i32, %arg1: i32) -> (i32, i32, i32) {
    %c0_i32 = arith.constant 0 : i32
    %c0_i32_0 = arith.constant 0 : i32
    return %arg1, %arg0, %c0_i32 : i32, i32, i32
  }
  func.func @transform_1(%arg0: i32, %arg1: i32) -> (i32, i32, i32) {
    %c0_i32 = arith.constant 0 : i32
    %c0_i32_0 = arith.constant 0 : i32
    %c0_i32_1 = arith.constant 0 : i32
    %c0_i32_2 = arith.constant 0 : i32
    return %c0_i32, %c0_i32_0, %c0_i32_1 : i32, i32, i32
  }
  func.func @transform_2(%arg0: i32, %arg1: i32) -> (i32, i32, i32) {
    %c0_i32 = arith.constant 0 : i32
    %c0_i32_0 = arith.constant 0 : i32
    return %arg1, %arg0, %c0_i32 : i32, i32, i32
  }
}

</mosaic_0001>

<bundles_post_ra>
// kernel: _pe_add.1
= control target key start
LH: loop header
LB: loop body
LE: loop exit
PB: predicated region body
PF: predicated region fallthrough
CT: control target
= control target key end

     0   :  { %7 = vsyncpa [#allocation3], 0  ;;  %s186_s0 = inlined_call_operand.hbm [shape: f32[2,8,32], index: 0, kind: input, shape index: {}, may-alias: {0,2}]   ;;  %s187_s1 = inlined_call_operand.hbm [shape: f32[1,1,32], index: 1, kind: input, shape index: {}]   ;;  %s188_s2 = inlined_call_operand.hbm [shape: f32[2,8,32], index: 2, kind: output, shape index: {}, may-alias: {0,2}]  }
   0x1   :  { %8 = vsyncpa [#allocation6], 0 }
   0x2   :  { %9 = vsyncpa [#allocation4], 0  ;;  %s14_s11 = sshll.u32 %s186_s0, 4  ;;  %s157_s12 = smov [#allocation2]   ;;  %s15_s11 = int_to_ptr.hbm [resolvable:$true] %s14_s11 }
   0x3   :  { %s16_s13 = sshll.u32 %s157_s12, 4  ;;  %s28_s16 = sshll.u32 %s187_s1, 4  ;;  %s17_s13 = int_to_ptr.vmem [resolvable:$true] %s16_s13  ;;  %s29_s16 = int_to_ptr.hbm [resolvable:$true] %s28_s16 }
   0x4   :  { %s158_s17 = smov 128   ;;  %s159_s18 = smov 8  }
   0x5   :  { %22 = dma.hbm_to_vmem [thread:$0]  %s15_s11, 256, %s17_s13, [#allocation3], %s158_s17, %s158_s17, %s159_s18  }
   0x6   :  { %s160_s19 = smov [#allocation5]  }
   0x7   :  { %s30_s20 = sshll.u32 %s160_s19, 4  ;;  %s31_s20 = int_to_ptr.vmem [resolvable:$true] %s30_s20 }
   0x8   :  { %33 = dma.hbm_to_vmem [thread:$0]  %s29_s16, 16, %s31_s20, [#allocation6]  }
   0x9   :  { %151 = dma.done.wait [#allocation3], 256  }
   0xa   :  { %152 = vsyncadd [#allocation3], 4294967040 }
   0xb   :  { %153 = dma.done.wait [#allocation6], 16  }
   0xc   :  { %154 = vsyncadd [#allocation6], 4294967280  ;;  %s59_s22 = sshll.u32 %s188_s2, 4  ;;  %v42_v0 = vld [vmem:[#allocation2] sm:$0xff]  ;;  %v78_v1 = vld [vmem:[#allocation5] ss:$0 sm:$0xff]  ;;  %s60_s22 = int_to_ptr.hbm [resolvable:$true] %s59_s22 }
   0xd   :  { %s161_s23 = smov [#allocation7]   ;;  %vm50_vm0 = vcmask 261120   ;;  %v43_v2 = vld [vmem:[#allocation2 + $0x8] sm:$0xff]  ;;  %v48_v3 = vadd.f32 %v78_v1, %v42_v0 }
   0xe   :  { %s57_s1 = sshll.u32 %s161_s23, 4  ;;  %v49_v4 = vadd.f32 %v78_v1, %v43_v2  ;;  %s58_s1 = int_to_ptr.vmem [resolvable:$true] %s57_s1 }
   0xf   :  { %51 = vst.msk [vmem:[#allocation7] sm:$0xff] %vm50_vm0, %v48_v3 }
  0x10   :  { %52 = vst.msk [vmem:[#allocation7 + $0x8] sm:$0xff] %vm50_vm0, %v49_v4 }
  0x11   :  { %65 = dma.vmem_to_hbm [thread:$0]  %s58_s1, 256, %s60_s22, [#allocation4], %s158_s17, %s158_s17, %s159_s18  }
  0x12   :  { %155 = dma.done.wait [#allocation4], 256  }
  0x13   :  { %156 = vsyncadd [#allocation4], 4294967040 }
  0x14   :  { %70 = vsyncpa [#allocation3], 1 }
  0x15   :  { %71 = vsyncpa [#allocation6], 1 }
  0x16   :  { %72 = vsyncpa [#allocation4], 1 }

</bundles_post_ra>
